<compile_context>
chip_gen: v6e
topology: v6e:2x2x1
jax: 0.10.0
libtpu: 0.0.40
codegen_flags: <defaults>
</compile_context>

<pallas_src>
import functools

import jax
import jax.numpy as jnp
from jax.experimental import pallas as pl
from jax.experimental.pallas import tpu as pltpu


def _round_up(x, m):
    return ((x + m - 1) // m) * m


def _fused_mlp_kernel(*refs, n_layers, eps):
    """refs = (x_ref, [w0, g0, b0, w1, g1, b1, ..., w_last], o_ref)."""
    x_ref = refs[0]
    o_ref = refs[-1]
    p_refs = refs[1:-1]

    h = x_ref[...]
    idx = 0
    for i in range(n_layers):
        w = p_refs[idx][...]
        idx += 1
        # Native-dtype operands into the MXU, f32 accumulation.
        lhs = h if h.dtype == w.dtype else h.astype(w.dtype)
        y = jnp.dot(lhs, w, preferred_element_type=jnp.float32)
        if i < n_layers - 1:
            # exact (erf-based) GELU, matching transformers' `gelu`
            y = 0.5 * y * (1.0 + jax.lax.erf(y * jnp.float32(0.7071067811865476)))
            # LayerNorm over the feature (last) dim, eps = 1e-5 (PyTorch default)
            mean = jnp.mean(y, axis=-1, keepdims=True)
            var = jnp.mean(jnp.square(y - mean), axis=-1, keepdims=True)
            y = (y - mean) * jax.lax.rsqrt(var + eps)
            g = p_refs[idx][...].astype(jnp.float32)
            b = p_refs[idx + 1][...].astype(jnp.float32)
            idx += 2
            y = y * g + b
        h = y  # stays in f32 VMEM between layers
    o_ref[...] = h.astype(o_ref.dtype)


def mlp_forward(x, params, tm=256):
    """Fused forward pass of MLP (inference mode: dropout is identity)."""
    weights = params["weights"]
    gammas = params["gammas"]
    betas = params["betas"]
    n_layers = len(weights)

    M, K0 = x.shape
    assert K0 == weights[0].shape[0]
    N_out = weights[-1].shape[1]

    # Row tiling: MXU-sized for big M, shrunk (multiple of 16 -> works for f32
    # and bf16 sublane packing) for small M.  Pad ragged M with zero rows.
    tm_eff = min(tm, _round_up(M, 16))
    M_pad = _round_up(M, tm_eff)
    x_p = x if M_pad == M else jnp.pad(x, ((0, M_pad - M), (0, 0)))

    # Assemble kernel operands: x, then per layer (w [, gamma, beta]).
    operands = [x_p]
    in_specs = [pl.BlockSpec((tm_eff, K0), lambda i: (i, 0))]
    for li, w in enumerate(weights):
        k_i, n_i = w.shape
        operands.append(w)
        in_specs.append(pl.BlockSpec((k_i, n_i), lambda i: (0, 0)))  # VMEM-resident
        if li < n_layers - 1:
            operands.append(gammas[li])
            operands.append(betas[li])
            in_specs.append(pl.BlockSpec((1, n_i), lambda i: (0, 0)))
            in_specs.append(pl.BlockSpec((1, n_i), lambda i: (0, 0)))

    kernel = functools.partial(_fused_mlp_kernel, n_layers=n_layers, eps=1e-5)

    out = pl.pallas_call(
        kernel,
        out_shape=jax.ShapeDtypeStruct((M_pad, N_out), x.dtype),
        grid_spec=pltpu.PrefetchScalarGridSpec(
            num_scalar_prefetch=0,
            grid=(M_pad // tm_eff,),
            in_specs=in_specs,
            out_specs=pl.BlockSpec((tm_eff, N_out), lambda i: (i, 0)),
        ),
        compiler_params=pltpu.CompilerParams(
            dimension_semantics=("parallel",),  # shards row tiles across v7x's 2 TCs
        ),
    )(*operands)

    return out[:M] if M_pad != M else out


def init_mlp_params(key, input_sizes, dtype=jnp.float32):
    """Deterministic synthetic parameters matching MLP(input_sizes, bias=False)."""
    weights, gammas, betas = [], [], []
    for i in range(1, len(input_sizes)):
        key, sub = jax.random.split(key)
        # nn.Linear weight is [out, in]; store transposed as [in, out] for the kernel.
        w = (0.02 * jax.random.normal(sub, (input_sizes[i - 1], input_sizes[i]))).astype(dtype)
        weights.append(w)
    if len(input_sizes) > 2:
        for i in range(1, len(input_sizes) - 1):
            gammas.append(jnp.ones((1, input_sizes[i]), dtype))   # nn.LayerNorm weight init
            betas.append(jnp.zeros((1, input_sizes[i]), dtype))   # nn.LayerNorm bias init
    return {"weights": weights, "gammas": gammas, "betas": betas}


def _mlp_reference(x, params, eps=1e-5):
    """Pure-JAX reference matching the PyTorch MLP forward (eval mode)."""
    weights, gammas, betas = params["weights"], params["gammas"], params["betas"]
    n_layers = len(weights)
    h = x.astype(jnp.float32)
    for i, w in enumerate(weights):
        h = h @ w.astype(jnp.float32)
        if i < n_layers - 1:
            h = 0.5 * h * (1.0 + jax.lax.erf(h / jnp.sqrt(2.0).astype(jnp.float32)))
            mean = jnp.mean(h, axis=-1, keepdims=True)
            var = jnp.mean(jnp.square(h - mean), axis=-1, keepdims=True)
            h = (h - mean) * jax.lax.rsqrt(var + eps)
            h = h * gammas[i].astype(jnp.float32) + betas[i].astype(jnp.float32)
    return h.astype(x.dtype)


if __name__ == "__main__":
    key = jax.random.PRNGKey(0)
    input_sizes = (32, 64, 16)   # 2 Linear layers, 1 intermediate LayerNorm
    rows = 20                    # deliberately not a tile multiple (ragged-M path)

    key, kx = jax.random.split(key)
    x = jax.random.normal(kx, (rows, input_sizes[0]), dtype=jnp.float32)

    params = init_mlp_params(key, input_sizes)

    out = mlp_forward(x, params)
    jax.block_until_ready(out)
    assert out.shape == (rows, input_sizes[-1])

    ref = _mlp_reference(x, params)
    assert jnp.allclose(out, ref, atol=1e-4, rtol=1e-4), "mismatch vs reference"

    print("KERNEL_OK")
</pallas_src>

<mosaic_0001>
module attributes {stable_mosaic.version = 11 : i64} {
  func.func @_fused_mlp_kernel(%arg0: i32, %arg1: memref<32x32xf32, #tpu.memory_space<vmem>>, %arg2: memref<32x64xf32, #tpu.memory_space<vmem>>, %arg3: memref<1x64xf32, #tpu.memory_space<vmem>>, %arg4: memref<1x64xf32, #tpu.memory_space<vmem>>, %arg5: memref<64x16xf32, #tpu.memory_space<vmem>>, %arg6: memref<32x16xf32, #tpu.memory_space<vmem>>) attributes {dimension_semantics = [#tpu.dimension_semantics<parallel>], iteration_bounds = array<i64: 1>, scalar_prefetch = 0 : i64, scratch_operands = 0 : i64, tpu.core_type = #tpu.core_type<tc>, window_params = [{transform_indices = @transform_0, window_bounds = array<i64: 32, 32>}, {pipeline_mode = #tpu.pipeline_mode<synchronous>, transform_indices = @transform_1, window_bounds = array<i64: 32, 64>}, {pipeline_mode = #tpu.pipeline_mode<synchronous>, transform_indices = @transform_2, window_bounds = array<i64: 1, 64>}, {pipeline_mode = #tpu.pipeline_mode<synchronous>, transform_indices = @transform_3, window_bounds = array<i64: 1, 64>}, {pipeline_mode = #tpu.pipeline_mode<synchronous>, transform_indices = @transform_4, window_bounds = array<i64: 64, 16>}, {transform_indices = @transform_5, window_bounds = array<i64: 32, 16>}]} {
    %c0 = arith.constant 0 : index
    %c0_0 = arith.constant 0 : index
    %0 = vector.load %arg1[%c0, %c0_0] : memref<32x32xf32, #tpu.memory_space<vmem>>, vector<32x32xf32>
    %c0_1 = arith.constant 0 : index
    %c0_2 = arith.constant 0 : index
    %1 = vector.load %arg2[%c0_1, %c0_2] : memref<32x64xf32, #tpu.memory_space<vmem>>, vector<32x64xf32>
    %cst = arith.constant dense<0.000000e+00> : vector<32x64xf32>
    %2 = tpu.matmul %0, %1, %cst {dimension_numbers = #tpu.dot_dimension_numbers<[1], [0], [0], [1], [0, 0, 1, 1], [], []>} : vector<32x32xf32>, vector<32x64xf32>, vector<32x64xf32> -> vector<32x64xf32>
    %cst_3 = arith.constant 5.000000e-01 : f32
    %3 = vector.broadcast %cst_3 : f32 to vector<32x64xf32>
    %4 = arith.mulf %3, %2 : vector<32x64xf32>
    %cst_4 = arith.constant 0.707106769 : f32
    %5 = vector.broadcast %cst_4 : f32 to vector<32x64xf32>
    %6 = arith.mulf %2, %5 : vector<32x64xf32>
    %7 = math.erf %6 : vector<32x64xf32>
    %cst_5 = arith.constant 1.000000e+00 : f32
    %8 = vector.broadcast %cst_5 : f32 to vector<32x64xf32>
    %9 = arith.addf %8, %7 : vector<32x64xf32>
    %10 = arith.mulf %4, %9 : vector<32x64xf32>
    %cst_6 = arith.constant dense<0.000000e+00> : vector<32xf32>
    %11 = vector.multi_reduction <add>, %10, %cst_6 [1] : vector<32x64xf32> to vector<32xf32>
    %12 = vector.shape_cast %11 : vector<32xf32> to vector<32x1xf32>
    %cst_7 = arith.constant 6.400000e+01 : f32
    %13 = vector.broadcast %cst_7 : f32 to vector<32x1xf32>
    %14 = arith.divf %12, %13 : vector<32x1xf32>
    %15 = vector.broadcast %14 : vector<32x1xf32> to vector<32x64xf32>
    %16 = arith.subf %10, %15 : vector<32x64xf32>
    %17 = arith.mulf %16, %16 : vector<32x64xf32>
    %cst_8 = arith.constant dense<0.000000e+00> : vector<32xf32>
    %18 = vector.multi_reduction <add>, %17, %cst_8 [1] : vector<32x64xf32> to vector<32xf32>
    %19 = vector.shape_cast %18 : vector<32xf32> to vector<32x1xf32>
    %cst_9 = arith.constant 6.400000e+01 : f32
    %20 = vector.broadcast %cst_9 : f32 to vector<32x1xf32>
    %21 = arith.divf %19, %20 : vector<32x1xf32>
    %22 = vector.broadcast %14 : vector<32x1xf32> to vector<32x64xf32>
    %23 = arith.subf %10, %22 : vector<32x64xf32>
    %cst_10 = arith.constant 9.99999974E-6 : f32
    %24 = vector.broadcast %cst_10 : f32 to vector<32x1xf32>
    %25 = arith.addf %21, %24 : vector<32x1xf32>
    %26 = math.rsqrt %25 : vector<32x1xf32>
    %27 = vector.broadcast %26 : vector<32x1xf32> to vector<32x64xf32>
    %28 = arith.mulf %23, %27 : vector<32x64xf32>
    %c0_11 = arith.constant 0 : index
    %c0_12 = arith.constant 0 : index
    %29 = vector.load %arg3[%c0_11, %c0_12] : memref<1x64xf32, #tpu.memory_space<vmem>>, vector<1x64xf32>
    %c0_13 = arith.constant 0 : index
    %c0_14 = arith.constant 0 : index
    %30 = vector.load %arg4[%c0_13, %c0_14] : memref<1x64xf32, #tpu.memory_space<vmem>>, vector<1x64xf32>
    %31 = vector.broadcast %29 : vector<1x64xf32> to vector<32x64xf32>
    %32 = arith.mulf %28, %31 : vector<32x64xf32>
    %33 = vector.broadcast %30 : vector<1x64xf32> to vector<32x64xf32>
    %34 = arith.addf %32, %33 : vector<32x64xf32>
    %c0_15 = arith.constant 0 : index
    %c0_16 = arith.constant 0 : index
    %35 = vector.load %arg5[%c0_15, %c0_16] : memref<64x16xf32, #tpu.memory_space<vmem>>, vector<64x16xf32>
    %cst_17 = arith.constant dense<0.000000e+00> : vector<32x16xf32>
    %36 = tpu.matmul %34, %35, %cst_17 {dimension_numbers = #tpu.dot_dimension_numbers<[1], [0], [0], [1], [0, 0, 1, 1], [], []>} : vector<32x64xf32>, vector<64x16xf32>, vector<32x16xf32> -> vector<32x16xf32>
    %c0_18 = arith.constant 0 : index
    %c0_19 = arith.constant 0 : index
    %37 = vector.load %arg6[%c0_18, %c0_19] : memref<32x16xf32, #tpu.memory_space<vmem>>, vector<32x16xf32>
    tpu.vector_store %arg6[%c0_18, %c0_19], %36 {strides = array<i32>} : memref<32x16xf32, #tpu.memory_space<vmem>>, vector<32x16xf32>,
    return
  }
  func.func @transform_0(%arg0: i32) -> (i32, i32) {
    %c0_i32 = arith.constant 0 : i32
    %c0_i32_0 = arith.constant 0 : i32
    return %arg0, %c0_i32 : i32, i32
  }
  func.func @transform_1(%arg0: i32) -> (i32, i32) {
    %c0_i32 = arith.constant 0 : i32
    %c0_i32_0 = arith.constant 0 : i32
    %c0_i32_1 = arith.constant 0 : i32
    return %c0_i32, %c0_i32_0 : i32, i32
  }
  func.func @transform_2(%arg0: i32) -> (i32, i32) {
    %c0_i32 = arith.constant 0 : i32
    %c0_i32_0 = arith.constant 0 : i32
    %c0_i32_1 = arith.constant 0 : i32
    return %c0_i32, %c0_i32_0 : i32, i32
  }
  func.func @transform_3(%arg0: i32) -> (i32, i32) {
    %c0_i32 = arith.constant 0 : i32
    %c0_i32_0 = arith.constant 0 : i32
    %c0_i32_1 = arith.constant 0 : i32
    return %c0_i32, %c0_i32_0 : i32, i32
  }
  func.func @transform_4(%arg0: i32) -> (i32, i32) {
    %c0_i32 = arith.constant 0 : i32
    %c0_i32_0 = arith.constant 0 : i32
    %c0_i32_1 = arith.constant 0 : i32
    return %c0_i32, %c0_i32_0 : i32, i32
  }
  func.func @transform_5(%arg0: i32) -> (i32, i32) {
    %c0_i32 = arith.constant 0 : i32
    %c0_i32_0 = arith.constant 0 : i32
    return %arg0, %c0_i32 : i32, i32
  }
}

</mosaic_0001>

<bundles_post_ra>
// kernel: tpu_custom_call.1
= control target key start
LH: loop header
LB: loop body
LE: loop exit
PB: predicated region body
PF: predicated region fallthrough
CT: control target
= control target key end

     0   :  { %vm28_vm0 = vcmask 261120   ;;  %vm146_vm1 = vcmask 523264   ;;  %vm327_vm2 = vcmask 130048   ;;  %s550_s1 = inlined_call_operand.vmem [shape: f32[32,64], index: 1, kind: input, shape index: {}]   ;;  %s551_s0 = inlined_call_operand.vmem [shape: f32[32,32], index: 0, kind: input, shape index: {}]   ;;  %s552_s4 = inlined_call_operand.vmem [shape: f32[64,16], index: 4, kind: input, shape index: {}]   ;;  %s553_s2 = inlined_call_operand.vmem [shape: f32[1,64], index: 2, kind: input, shape index: {}]   ;;  %s554_s3 = inlined_call_operand.vmem [shape: f32[1,64], index: 3, kind: input, shape index: {}]   ;;  %s555_s5 = inlined_call_operand.vmem [shape: f32[32,16], index: 5, kind: output, shape index: {}]  }
   0x1   :  { %v27_v0 = vld [vmem:[%s550_s1 + $0x18] sm:$0xff]  ;;  %v26_v1 = vld [vmem:[%s550_s1 + $0x10] sm:$0xff]  ;;  %v20_v2 = vld [vmem:[%s551_s0] sm:$0xff] }
   0x2   :  { %366 = vmatprep.subr.mxu0 %v27_v0  ;;  %v25_v3 = vld [vmem:[%s550_s1 + $0x8] sm:$0xff]  ;;  %374 = vmatprep.mubr.msk.f32.mxu0 %vm28_vm0, %v20_v2  ;;  %v24_v4 = vld [vmem:[%s550_s1] sm:$0xff]  ;;  %v22_v6 = vld [vmem:[%s551_s0 + $0x10] sm:$0xff] }
   0x3   :  { %367 = vmatpush3.msra.mxu0 %v27_v0  ;;  %v21_v5 = vld [vmem:[%s551_s0 + $0x8] sm:$0xff]  ;;  %v23_v7 = vld [vmem:[%s551_s0 + $0x18] sm:$0xff]  ;;  %v228_v57 = vld [vmem:[%s552_s4 + $0x30] sm:$0xff] }
   0x4   :  { %368 = vmatprep.subr.mxu0 %v26_v1  ;;  %v229_v56 = vld [vmem:[%s552_s4 + $0x38] sm:$0xff]  ;;  %v227_v58 = vld [vmem:[%s552_s4 + $0x28] sm:$0xff]  ;;  %v226_v59 = vld [vmem:[%s552_s4 + $0x20] sm:$0xff] }
   0x5   :  { %369 = vmatpush3.msra.mxu0 %v26_v1  ;;  %380 = vmatprep.subr.mxu1 %v229_v56  ;;  %v225_v60 = vld [vmem:[%s552_s4 + $0x18] sm:$0xff]  ;;  %v224_v61 = vld [vmem:[%s552_s4 + $0x10] sm:$0xff]  ;;  %v223_v62 = vld [vmem:[%s552_s4 + $0x8] sm:$0xff] }
   0x6   :  { %370 = vmatprep.subr.mxu0 %v25_v3  ;;  %381 = vmatpush3.msra.mxu1 %v229_v56  ;;  %v222_v63 = vld [vmem:[%s552_s4] sm:$0xff] }
   0x7   :  { %371 = vmatpush3.msra.mxu0 %v25_v3  ;;  %382 = vmatprep.subr.mxu1 %v228_v57 }
   0x8   :  { %372 = vmatprep.subr.mxu0 %v24_v4  ;;  %383 = vmatpush3.msra.mxu1 %v228_v57 }
   0x9   :  { %373 = vmatpush3.msra.mxu0 %v24_v4  ;;  %384 = vmatprep.subr.mxu1 %v227_v58 }
   0xa   :  { %375 = vmatmul.mubr.msk.f32.vlgmr.msra.gmra.mxu0 %vm28_vm0, %v21_v5  ;;  %385 = vmatpush3.msra.mxu1 %v227_v58 }
   0xb   :  { %377 = vmatprep.mubr.msk.f32.mxu0 %vm28_vm0, %v22_v6  ;;  %386 = vmatprep.subr.mxu1 %v226_v59 }
   0xc   :  { %387 = vmatpush3.msra.mxu1 %v226_v59 }
   0xd   :  { %388 = vmatprep.subr.mxu1 %v225_v60 }
   0xe   :  { %378 = vmatmul.mubr.msk.f32.gmra.mxu0 %vm28_vm0, %v23_v7  ;;  %389 = vmatpush3.msra.mxu1 %v225_v60 }
   0xf   :  { %390 = vmatprep.subr.mxu1 %v224_v61 }
  0x10   :  { %391 = vmatpush3.msra.mxu1 %v224_v61 }
  0x11   :  { %392 = vmatprep.subr.mxu1 %v223_v62 }
  0x12   :  { %393 = vmatpush3.msra.mxu1 %v223_v62 }
  0x13   :  { %394 = vmatprep.subr.mxu1 %v222_v63 }
  0x14   :  { %395 = vmatpush3.msra.mxu1 %v222_v63 }
  0xca   :  { %v376_v8 = vpop.f32.mrf.mxu0 }
  0xcb   :  { %v131_v9 = vmul.f32 0.70710677, %v376_v8  ;;  %v127_v22 = vmul.f32 0.5, %v376_v8 }
  0xcc   :  { %v107_v10 = vpop.f32.mrf.mxu0 }
  0xcd   :  { %402 = verf.f32 %v131_v9  ;;  %v130_v11 = vmul.f32 0.70710677, %v107_v10  ;;  %v126_v18 = vmul.f32 0.5, %v107_v10 }
  0xce   :  { %v379_v12 = vpop.f32.mrf.mxu0 }
  0xcf   :  { %404 = verf.f32 %v130_v11  ;;  %v133_v13 = vmul.f32 0.70710677, %v379_v12  ;;  %v129_v30 = vmul.f32 0.5, %v379_v12 }
  0xd0   :  { %v117_v14 = vpop.f32.mrf.mxu0 }
  0xd1   :  { %406 = verf.f32 %v133_v13  ;;  %v132_v15 = vmul.f32 0.70710677, %v117_v14  ;;  %v128_v25 = vmul.f32 0.5, %v117_v14  ;;  %v340_v13 = vld [vmem:[%s553_s2] ss:$0 sm:$0xff] }
  0xd3   :  { %408 = verf.f32 %v132_v15  ;;  %v341_v15 = vld [vmem:[%s554_s3] ss:$0 sm:$0xff] }
  0xda   :  { %v403_v16 = vpop.eup %402 }
  0xdb   :  { %v139_v20 = vadd.f32 1.0, %v403_v16 }
  0xdc   :  { %v405_v17 = vpop.eup %404 }
  0xdd   :  { %v138_v19 = vadd.f32 1.0, %v405_v17  ;;  %v143_v27 = vmul.f32 %v139_v20, %v127_v22 }
  0xde   :  { %v407_v21 = vpop.eup %406 }
  0xdf   :  { %v142_v23 = vmul.f32 %v138_v19, %v126_v18  ;;  %v141_v29 = vadd.f32 1.0, %v407_v21  ;;  %v150_v32 = vsel %vm146_vm1, %v143_v27, 0.0 }
  0xe0   :  { %v409_v24 = vpop.eup %408 }
  0xe1   :  { %v147_v26 = vsel %vm146_vm1, %v142_v23, 0.0  ;;  %v140_v28 = vadd.f32 1.0, %v409_v24  ;;  %v145_v34 = vmul.f32 %v141_v29, %v129_v30 }
  0xe2   :  { %148 = vadd.xlane.f32.xlu0 %v147_v26 }
  0xe3   :  { %v144_v31 = vmul.f32 %v140_v28, %v128_v25  ;;  %v156_v35 = vsel %vm146_vm1, %v145_v34, 0.0 }
  0xe5   :  { %v153_v33 = vsel %vm146_vm1, %v144_v31, 0.0 }
  0xe6   :  { %151 = vadd.xlane.f32.xlu0 %v150_v32  ;;  %154 = vadd.xlane.f32.xlu1 %v153_v33 }
  0xea   :  { %157 = vadd.xlane.f32.xlu1 %v156_v35 }
 0x16b   :  { %v149_v36 = vpop.xlane.xlu0 %148 }
 0x16c   :  { %v160_v37 = vmul.f32 0.015625, %v149_v36 }
 0x16e   :  { %v480_v38 = vsub.f32 %v142_v23, %v160_v37 }
 0x16f   :  { %v152_v39 = vpop.xlane.xlu0 %151  ;;  %v155_v40 = vpop.xlane.xlu1 %154 }
 0x170   :  { %v161_v41 = vmul.f32 0.015625, %v152_v39  ;;  %v162_v42 = vmul.f32 0.015625, %v155_v40  ;;  %v168_v43 = vmul.f32 %v480_v38, %v480_v38 }
 0x172   :  { %v484_v44 = vsub.f32 %v143_v27, %v161_v41  ;;  %v486_v45 = vsub.f32 %v144_v31, %v162_v42  ;;  %v172_v46 = vsel %vm146_vm1, %v168_v43, 0.0 }
 0x173   :  { %173 = vadd.xlane.f32.xlu0 %v172_v46  ;;  %v158_v47 = vpop.xlane.xlu1 %157 }
 0x174   :  { %v163_v48 = vmul.f32 0.015625, %v158_v47  ;;  %v169_v49 = vmul.f32 %v484_v44, %v484_v44  ;;  %v170_v50 = vmul.f32 %v486_v45, %v486_v45 }
 0x176   :  { %v493_v51 = vsub.f32 %v145_v34, %v163_v48  ;;  %v175_v52 = vsel %vm146_vm1, %v169_v49, 0.0  ;;  %v178_v53 = vsel %vm146_vm1, %v170_v50, 0.0 }
 0x177   :  { %176 = vadd.xlane.f32.xlu1 %v175_v52  ;;  %179 = vadd.xlane.f32.xlu0 %v178_v53 }
 0x178   :  { %v171_v54 = vmul.f32 %v493_v51, %v493_v51 }
 0x17a   :  { %v181_v55 = vsel %vm146_vm1, %v171_v54, 0.0 }
 0x17b   :  { %182 = vadd.xlane.f32.xlu1 %v181_v55 }
 0x1fc   :  { %v174_v0 = vpop.xlane.xlu0 %173 }
 0x1fd   :  { %v184_v1 = vmul.f32 0.015625, %v174_v0 }
 0x1ff   :  { %v188_v2 = vadd.f32 1e-05, %v184_v1 }
 0x200   :  { %v180_v3 = vpop.xlane.xlu0 %179  ;;  %v177_v4 = vpop.xlane.xlu1 %176 }
 0x201   :  { %410 = vrsqrt.f32 %v188_v2  ;;  %v186_v5 = vmul.f32 0.015625, %v180_v3  ;;  %v185_v6 = vmul.f32 0.015625, %v177_v4 }
 0x203   :  { %v190_v7 = vadd.f32 1e-05, %v186_v5  ;;  %v189_v8 = vadd.f32 1e-05, %v185_v6 }
 0x204   :  { %v183_v9 = vpop.xlane.xlu1 %182 }
 0x205   :  { %412 = vrsqrt.f32 %v190_v7  ;;  %v187_v10 = vmul.f32 0.015625, %v183_v9 }
 0x206   :  { %414 = vrsqrt.f32 %v189_v8 }
 0x207   :  { %v191_v11 = vadd.f32 1e-05, %v187_v10 }
 0x209   :  { %416 = vrsqrt.f32 %v191_v11 }
 0x20e   :  { %v411_v12 = vpop.eup %410 }
 0x20f   :  { %v196_v14 = vmul.f32 %v411_v12, %v480_v38 }
 0x211   :  { %v208_v16 = vmul.f32 %v340_v13, %v196_v14 }
 0x212   :  { %v413_v17 = vpop.eup %412 }
 0x213   :  { %v415_v18 = vpop.eup %414  ;;  %v218_v19 = vadd.f32 %v341_v15, %v208_v16  ;;  %v198_v20 = vmul.f32 %v413_v17, %v486_v45 }
 0x214   :  { %v197_v21 = vmul.f32 %v415_v18, %v484_v44 }
 0x215   :  { %396 = vmatprep.mubr.msk.f32.mxu1 %vm146_vm1, %v218_v19  ;;  %v210_v22 = vmul.f32 %v340_v13, %v198_v20 }
 0x216   :  { %v417_v23 = vpop.eup %416  ;;  %v209_v24 = vmul.f32 %v340_v13, %v197_v21 }
 0x217   :  { %v220_v25 = vadd.f32 %v341_v15, %v210_v22  ;;  %v199_v26 = vmul.f32 %v417_v23, %v493_v51 }
 0x218   :  { %v219_v27 = vadd.f32 %v341_v15, %v209_v24 }
 0x219   :  { %v211_v28 = vmul.f32 %v340_v13, %v199_v26 }
 0x21a   :  { %397 = vmatmul.mubr.msk.f32.vlgmr.msra.gmra.mxu1 %vm146_vm1, %v219_v27 }
 0x21b   :  { %399 = vmatprep.mubr.msk.f32.mxu1 %vm146_vm1, %v220_v25  ;;  %v221_v29 = vadd.f32 %v341_v15, %v211_v28 }
 0x21e   :  { %400 = vmatmul.mubr.msk.f32.gmra.mxu1 %vm146_vm1, %v221_v29 }
 0x2da   :  { %v398_v30 = vpop.f32.mrf.mxu1 }
 0x2db   :  { %329 = vst.msk [vmem:[%s555_s5 + $0x8] sm:$0xff] %vm327_vm2, %v398_v30 }
 0x2dc   :  { %v308_v31 = vpop.f32.mrf.mxu1 }
 0x2dd   :  { %328 = vst.msk [vmem:[%s555_s5] sm:$0xff] %vm327_vm2, %v308_v31 }
 0x2de   :  { %v401_v32 = vpop.f32.mrf.mxu1 }
 0x2df   :  { %331 = vst.msk [vmem:[%s555_s5 + $0x18] sm:$0xff] %vm327_vm2, %v401_v32 }
 0x2e0   :  { %v318_v33 = vpop.f32.mrf.mxu1 }
 0x2e1   :  { %330 = vst.msk [vmem:[%s555_s5 + $0x10] sm:$0xff] %vm327_vm2, %v318_v33 }

</bundles_post_ra>
